<compile_context>
chip_gen: v7x
topology: tpu7x:2x2x1
jax: 0.10.0
libtpu: 0.0.40
codegen_flags: <defaults>
</compile_context>

<pallas_src>
import jax
import jax.numpy as jnp
from jax.experimental import pallas as pl
from jax.experimental.pallas import tpu as pltpu


def _round_up(x, m):
    return ((x + m - 1) // m) * m


def _embedding_kernel(x_ref, w0_ref, b0_ref, w1_ref, b1_ref, o_ref):
    # x_ref : (1, C_in, tile_n)     input slab (NCW layout), f32
    # w0_ref: (C_mid, C_in)         conv0 weight with BN0 scale folded in, f32
    # b0_ref: (C_mid, 1)            folded conv0/BN0 bias, f32
    # w1_ref: (C_out, C_mid)        conv1 weight with BN1 scale folded in, bf16
    # b1_ref: (C_out, 1)            folded conv1/BN1 bias, f32
    # o_ref : (1, C_out, tile_n)    output slab (NCW layout)
    x = x_ref[0]                      # (C_in, tile_n)
    w0 = w0_ref[...]                  # (C_mid, C_in)
    c_in = x.shape[0]
    tn = x.shape[1]
    c_mid = w0.shape[0]

    # ---- Layer 0: Conv1d(k=1) + folded-BN bias + ReLU -----------------------
    if c_in <= 8:
        # Tiny contraction: rank-1 broadcast FMAs on the VPU in exact f32;
        # keeps the MXU free for the real 128x128 matmul and avoids K-padding.
        h = jnp.broadcast_to(b0_ref[...], (c_mid, tn))
        for k in range(c_in):         # static unroll, c_in known at trace time
            h = h + w0[:, k:k + 1] * x[k:k + 1, :]
    else:
        h = jnp.dot(w0, x, preferred_element_type=jnp.float32) + b0_ref[...]
    # ReLU + cast straight to bf16: layer 1 becomes a single-pass bf16 MXU
    # matmul and the intermediate needs half the vregs/VMEM.
    h = jnp.maximum(h, 0.0).astype(jnp.bfloat16)

    # ---- Layer 1: Conv1d(k=1) + folded-BN bias + ReLU (bf16 MXU, f32 acc) ---
    h2 = jnp.dot(w1_ref[...], h, preferred_element_type=jnp.float32)
    h2 = h2 + b1_ref[...]
    o_ref[0] = jnp.maximum(h2, 0.0).astype(o_ref.dtype)


def embedding_forward(x_ncw, params, *, tile_n=1024, out_dtype=jnp.float32):
    """x_ncw: (B, C_in, N) float32.  Returns (B, 128, N) in out_dtype (NCW)."""
    w0s, b0, w1s, b1 = params
    B, C_in, N = x_ncw.shape
    C_mid = w0s.shape[0]
    C_out = w1s.shape[0]

    # Lane-dim blocks must be multiples of 128; cap for small N so we don't
    # over-allocate, but never pad the arrays — Pallas masks the ragged tile.
    tile_n = min(_round_up(tile_n, 128), _round_up(N, 128))
    grid = (B, pl.cdiv(N, tile_n))

    return pl.pallas_call(
        _embedding_kernel,
        out_shape=jax.ShapeDtypeStruct((B, C_out, N), out_dtype),
        grid_spec=pltpu.PrefetchScalarGridSpec(
            num_scalar_prefetch=0,
            grid=grid,
            in_specs=[
                pl.BlockSpec((1, C_in, tile_n), lambda b, j: (b, 0, j)),   # x
                pl.BlockSpec((C_mid, C_in), lambda b, j: (0, 0)),          # w0*s0
                pl.BlockSpec((C_mid, 1), lambda b, j: (0, 0)),             # bias0
                pl.BlockSpec((C_out, C_mid), lambda b, j: (0, 0)),         # w1*s1 (bf16)
                pl.BlockSpec((C_out, 1), lambda b, j: (0, 0)),             # bias1
            ],
            out_specs=pl.BlockSpec((1, C_out, tile_n), lambda b, j: (b, 0, j)),
        ),
        compiler_params=pltpu.CompilerParams(
            dimension_semantics=("parallel", "parallel")),
    )(x_ncw, w0s, b0, w1s, b1)


def init_params(key, in_channel, eps=1e-5):
    """Deterministic init mimicking PyTorch defaults, with BN folded in.

    Conv1d(k=1): weight (C_out, C_in) kaiming-uniform-ish, bias uniform.
    BatchNorm1d (eval form): gamma=1, beta=0, running_mean=0, running_var=1.
    BN scale folds into the weight; BN shift + conv bias into a bias.
    Layer-1 weight is stored as bf16 (single-pass MXU operand).
    """
    k0w, k0b, k1w, k1b = jax.random.split(key, 4)

    def conv_init(kw, kb, c_in, c_out):
        bound = 1.0 / jnp.sqrt(c_in)
        w = jax.random.uniform(kw, (c_out, c_in), jnp.float32, -bound, bound)
        b = jax.random.uniform(kb, (c_out,), jnp.float32, -bound, bound)
        return w, b

    def fold_bn(conv_w, conv_b, c_out):
        gamma = jnp.ones((c_out,), jnp.float32)
        beta = jnp.zeros((c_out,), jnp.float32)
        running_mean = jnp.zeros((c_out,), jnp.float32)
        running_var = jnp.ones((c_out,), jnp.float32)
        scale = gamma / jnp.sqrt(running_var + eps)          # (C_out,)
        fused_w = conv_w * scale[:, None]                    # (C_out, C_in)
        fused_b = (conv_b - running_mean) * scale + beta     # (C_out,)
        return fused_w, fused_b.reshape(c_out, 1)

    w0, b0c = conv_init(k0w, k0b, in_channel, 128)
    w1, b1c = conv_init(k1w, k1b, 128, 128)
    w0s, b0 = fold_bn(w0, b0c, 128)
    w1s, b1 = fold_bn(w1, b1c, 128)
    return (w0s, b0, w1s.astype(jnp.bfloat16), b1)


def reference_forward(x_ncw, params):
    """Plain-JAX reference with the same numerics (bf16 layer-1 operands)."""
    w0s, b0, w1s, b1 = params
    h = jnp.maximum(
        jnp.einsum("oc,bcn->bon", w0s, x_ncw,
                   precision=jax.lax.Precision.HIGHEST) + b0[None], 0.0)
    h_bf = h.astype(jnp.bfloat16)
    o = jnp.einsum("oc,bcn->bon", w1s.astype(jnp.float32),
                   h_bf.astype(jnp.float32),
                   precision=jax.lax.Precision.HIGHEST) + b1[None]
    return jnp.maximum(o, 0.0)


if __name__ == "__main__":
    key = jax.random.PRNGKey(0)
    kx, kp = jax.random.split(key)

    # Small synthetic NCW input; N deliberately NOT a multiple of 128 to
    # exercise the ragged-last-tile (masked store, no pad/slice) path.
    B, C_in, N = 2, 4, 200
    x = jax.random.normal(kx, (B, C_in, N), jnp.float32)
    params = init_params(kp, C_in)

    out = embedding_forward(x, params)
    out = jax.block_until_ready(out)

    ref = reference_forward(x, params)
    assert out.shape == (B, 128, N), out.shape
    assert jnp.allclose(out, ref, atol=2e-3, rtol=2e-3), "mismatch vs reference"

    print("KERNEL_OK")
</pallas_src>

<mosaic_0001>
module attributes {stable_mosaic.version = 11 : i64} {
  func.func @_embedding_kernel(%arg0: i32, %arg1: i32, %arg2: memref<1x4x256xf32, #tpu.memory_space<vmem>>, %arg3: memref<128x4xf32, #tpu.memory_space<vmem>>, %arg4: memref<128x1xf32, #tpu.memory_space<vmem>>, %arg5: memref<128x128xbf16, #tpu.memory_space<vmem>>, %arg6: memref<128x1xf32, #tpu.memory_space<vmem>>, %arg7: memref<1x128x256xf32, #tpu.memory_space<vmem>>) attributes {dimension_semantics = [#tpu.dimension_semantics<parallel>, #tpu.dimension_semantics<parallel>], iteration_bounds = array<i64: 2, 1>, scalar_prefetch = 0 : i64, scratch_operands = 0 : i64, tpu.core_type = #tpu.core_type<tc>, window_params = [{transform_indices = @transform_0, window_bounds = array<i64: 1, 4, 256>}, {pipeline_mode = #tpu.pipeline_mode<synchronous>, transform_indices = @transform_1, window_bounds = array<i64: 128, 4>}, {pipeline_mode = #tpu.pipeline_mode<synchronous>, transform_indices = @transform_2, window_bounds = array<i64: 128, 1>}, {pipeline_mode = #tpu.pipeline_mode<synchronous>, transform_indices = @transform_3, window_bounds = array<i64: 128, 128>}, {pipeline_mode = #tpu.pipeline_mode<synchronous>, transform_indices = @transform_4, window_bounds = array<i64: 128, 1>}, {transform_indices = @transform_5, window_bounds = array<i64: 1, 128, 256>}]} {
    %c0 = arith.constant 0 : index
    %c0_0 = arith.constant 0 : index
    %c0_1 = arith.constant 0 : index
    %0 = vector.load %arg2[%c0, %c0_0, %c0_1] : memref<1x4x256xf32, #tpu.memory_space<vmem>>, vector<1x4x256xf32>
    %1 = vector.shape_cast %0 : vector<1x4x256xf32> to vector<4x256xf32>
    %c0_2 = arith.constant 0 : index
    %c0_3 = arith.constant 0 : index
    %2 = vector.load %arg3[%c0_2, %c0_3] : memref<128x4xf32, #tpu.memory_space<vmem>>, vector<128x4xf32>
    %c0_4 = arith.constant 0 : index
    %c0_5 = arith.constant 0 : index
    %3 = vector.load %arg4[%c0_4, %c0_5] : memref<128x1xf32, #tpu.memory_space<vmem>>, vector<128x1xf32>
    %4 = vector.shape_cast %3 : vector<128x1xf32> to vector<128x1xf32>
    %5 = vector.broadcast %4 : vector<128x1xf32> to vector<128x256xf32>
    %6 = vector.extract_strided_slice %2 {offsets = [0, 0], sizes = [128, 1], strides = [1, 1]} : vector<128x4xf32> to vector<128x1xf32>
    %7 = vector.extract_strided_slice %1 {offsets = [0, 0], sizes = [1, 256], strides = [1, 1]} : vector<4x256xf32> to vector<1x256xf32>
    %8 = vector.broadcast %6 : vector<128x1xf32> to vector<128x256xf32>
    %9 = vector.broadcast %7 : vector<1x256xf32> to vector<128x256xf32>
    %10 = arith.mulf %8, %9 : vector<128x256xf32>
    %11 = arith.addf %5, %10 : vector<128x256xf32>
    %12 = vector.extract_strided_slice %2 {offsets = [0, 1], sizes = [128, 1], strides = [1, 1]} : vector<128x4xf32> to vector<128x1xf32>
    %13 = vector.extract_strided_slice %1 {offsets = [1, 0], sizes = [1, 256], strides = [1, 1]} : vector<4x256xf32> to vector<1x256xf32>
    %14 = vector.broadcast %12 : vector<128x1xf32> to vector<128x256xf32>
    %15 = vector.broadcast %13 : vector<1x256xf32> to vector<128x256xf32>
    %16 = arith.mulf %14, %15 : vector<128x256xf32>
    %17 = arith.addf %11, %16 : vector<128x256xf32>
    %18 = vector.extract_strided_slice %2 {offsets = [0, 2], sizes = [128, 1], strides = [1, 1]} : vector<128x4xf32> to vector<128x1xf32>
    %19 = vector.extract_strided_slice %1 {offsets = [2, 0], sizes = [1, 256], strides = [1, 1]} : vector<4x256xf32> to vector<1x256xf32>
    %20 = vector.broadcast %18 : vector<128x1xf32> to vector<128x256xf32>
    %21 = vector.broadcast %19 : vector<1x256xf32> to vector<128x256xf32>
    %22 = arith.mulf %20, %21 : vector<128x256xf32>
    %23 = arith.addf %17, %22 : vector<128x256xf32>
    %24 = vector.extract_strided_slice %2 {offsets = [0, 3], sizes = [128, 1], strides = [1, 1]} : vector<128x4xf32> to vector<128x1xf32>
    %25 = vector.extract_strided_slice %1 {offsets = [3, 0], sizes = [1, 256], strides = [1, 1]} : vector<4x256xf32> to vector<1x256xf32>
    %26 = vector.broadcast %24 : vector<128x1xf32> to vector<128x256xf32>
    %27 = vector.broadcast %25 : vector<1x256xf32> to vector<128x256xf32>
    %28 = arith.mulf %26, %27 : vector<128x256xf32>
    %29 = arith.addf %23, %28 : vector<128x256xf32>
    %cst = arith.constant 0.000000e+00 : f32
    %30 = vector.broadcast %cst : f32 to vector<128x256xf32>
    %31 = arith.maximumf %29, %30 : vector<128x256xf32>
    %32 = arith.truncf %31 : vector<128x256xf32> to vector<128x256xbf16>
    %c0_6 = arith.constant 0 : index
    %c0_7 = arith.constant 0 : index
    %33 = vector.load %arg5[%c0_6, %c0_7] : memref<128x128xbf16, #tpu.memory_space<vmem>>, vector<128x128xbf16>
    %cst_8 = arith.constant dense<0.000000e+00> : vector<128x256xf32>
    %34 = tpu.matmul %33, %32, %cst_8 {dimension_numbers = #tpu.dot_dimension_numbers<[1], [0], [0], [1], [0, 0, 1, 1], [], []>} : vector<128x128xbf16>, vector<128x256xbf16>, vector<128x256xf32> -> vector<128x256xf32>
    %c0_9 = arith.constant 0 : index
    %c0_10 = arith.constant 0 : index
    %35 = vector.load %arg6[%c0_9, %c0_10] : memref<128x1xf32, #tpu.memory_space<vmem>>, vector<128x1xf32>
    %36 = vector.broadcast %35 : vector<128x1xf32> to vector<128x256xf32>
    %37 = arith.addf %34, %36 : vector<128x256xf32>
    %cst_11 = arith.constant 0.000000e+00 : f32
    %38 = vector.broadcast %cst_11 : f32 to vector<128x256xf32>
    %39 = arith.maximumf %37, %38 : vector<128x256xf32>
    %c0_12 = arith.constant 0 : index
    %c0_13 = arith.constant 0 : index
    %c0_14 = arith.constant 0 : index
    %40 = vector.load %arg7[%c0_12, %c0_13, %c0_14] : memref<1x128x256xf32, #tpu.memory_space<vmem>>, vector<1x128x256xf32>
    %41 = vector.shape_cast %40 : vector<1x128x256xf32> to vector<128x256xf32>
    %42 = vector.shape_cast %39 : vector<128x256xf32> to vector<1x128x256xf32>
    tpu.vector_store %arg7[%c0_12, %c0_13, %c0_14], %42 {strides = array<i32>} : memref<1x128x256xf32, #tpu.memory_space<vmem>>, vector<1x128x256xf32>,
    return
  }
  func.func @transform_0(%arg0: i32, %arg1: i32) -> (i32, i32, i32) {
    %c0_i32 = arith.constant 0 : i32
    %c0_i32_0 = arith.constant 0 : i32
    return %arg0, %c0_i32, %arg1 : i32, i32, i32
  }
  func.func @transform_1(%arg0: i32, %arg1: i32) -> (i32, i32) {
    %c0_i32 = arith.constant 0 : i32
    %c0_i32_0 = arith.constant 0 : i32
    %c0_i32_1 = arith.constant 0 : i32
    return %c0_i32, %c0_i32_0 : i32, i32
  }
  func.func @transform_2(%arg0: i32, %arg1: i32) -> (i32, i32) {
    %c0_i32 = arith.constant 0 : i32
    %c0_i32_0 = arith.constant 0 : i32
    %c0_i32_1 = arith.constant 0 : i32
    return %c0_i32, %c0_i32_0 : i32, i32
  }
  func.func @transform_3(%arg0: i32, %arg1: i32) -> (i32, i32) {
    %c0_i32 = arith.constant 0 : i32
    %c0_i32_0 = arith.constant 0 : i32
    %c0_i32_1 = arith.constant 0 : i32
    return %c0_i32, %c0_i32_0 : i32, i32
  }
  func.func @transform_4(%arg0: i32, %arg1: i32) -> (i32, i32) {
    %c0_i32 = arith.constant 0 : i32
    %c0_i32_0 = arith.constant 0 : i32
    %c0_i32_1 = arith.constant 0 : i32
    return %c0_i32, %c0_i32_0 : i32, i32
  }
  func.func @transform_5(%arg0: i32, %arg1: i32) -> (i32, i32, i32) {
    %c0_i32 = arith.constant 0 : i32
    %c0_i32_0 = arith.constant 0 : i32
    return %arg0, %c0_i32, %arg1 : i32, i32, i32
  }
}

</mosaic_0001>

<bundles_post_ra>
// kernel: tpu_custom_call.1
= control target key start
LH: loop header
LB: loop body
LE: loop exit
PB: predicated region body
PF: predicated region fallthrough
CT: control target
= control target key end

     0   :  { %s1625_s18 = smov 0   ;;  %s1627_s19 = smov 0   ;;  %s2329_s0 = inlined_call_operand.vmem [shape: f32[2,4,200], index: 0, kind: input, shape index: {}]   ;;  %s2330_s1 = inlined_call_operand.vmem [shape: f32[128,4], index: 1, kind: input, shape index: {}]   ;;  %s2331_s2 = inlined_call_operand.vmem [shape: f32[128,1], index: 2, kind: input, shape index: {}]   ;;  %s2332_s3 = inlined_call_operand.vmem [shape: bf16[128,128], index: 3, kind: input, shape index: {}]   ;;  %s2333_s4 = inlined_call_operand.vmem [shape: f32[128,1], index: 4, kind: input, shape index: {}]   ;;  %s2334_s5 = inlined_call_operand.vmem [shape: f32[2,128,200], index: 5, kind: output, shape index: {}]  }
   0x1   :  { %s1629_s20 = smov 0  }
   0x2 LB: > { %s27_s21 = sadd.s32 1, %s1585_s19  ;;  %p1455_p0 = scmp.ge.s32.totalorder %s1589_s20, 1  ;;  %s1589_s20 = sphi %s1629_s20, %s15_s20   ;;  %s1585_s19 = sphi %s1627_s19, %s2339_s19   ;;  %s1581_s18 = sphi %s1625_s18, %s2338_s18  }
   0x3   : > { %p29_p1 = scmp.ge.s32.totalorder %s27_s21, 2  ;;  %p208_p2 = scmp.lt.s32.totalorder %s1589_s20, 3 }
   0x5   : > { %s2341_s21 = smov (%p29_p1, %s27_s21), 0  ;;  %p209_p3 = pnand %p1455_p0, %p208_p2 }
   0x6   : > { %v284_v0 = vld [vmem:[%s2331_s2 + $0x10] sm:$0xff] (!%p209_p3)  ;;  %v1591_v2 = vmov (!%p209_p3), 2   ;;  %v2335_v3 = vmov (!%p209_p3), 0   ;;  %v285_v4 = vld [vmem:[%s2331_s2 + $0x18] sm:$0xff] (!%p209_p3)  ;;  %v1662_v5 = vld [vmem:[%s2330_s1 + $0x28] sm:$0xff] (!%p209_p3)  ;;  %v1593_v10 = vmov (!%p209_p3), 1   ;;  %v459_v38 = vlaneseq (!%p209_p3) }
   0x7   : > { %212 = sbr.rel (%p209_p3) target bundleno = 627 (0x273), region = 40  ;;  %v1651_v1 = vld [vmem:[%s2330_s1 + $0x10] sm:$0xff] (!%p209_p3)  ;;  %1523 = vset.pattern.permute.xlu0 (!%p209_p3), %v1591_v2  ;;  %1516 = vset.pattern.permute.xlu1 (!%p209_p3), %v2335_v3  ;;  %v287_v6 = vld [vmem:[%s2331_s2 + $0x28] sm:$0xff] (!%p209_p3)  ;;  %v1673_v7 = vld [vmem:[%s2330_s1 + $0x40] sm:$0xff] (!%p209_p3)  ;;  %v1594_v18 = vmov (!%p209_p3), 3   ;;  %p245_p4 = scmp.lt.s32.totalorder (!%p209_p3), %s1581_s18, 1 }
   0x8   : > { %310 = vperm.xlu1 (!%p209_p3), %1516, %v284_v0   ;;  %696 = vperm.xlu0 (!%p209_p3), %1523, %v1651_v1   ;;  %v289_v8 = vld [vmem:[%s2331_s2 + $0x38] sm:$0xff] (!%p209_p3)  ;;  %v266_v9 = vld [vmem:[%s2330_s1] sm:$0xff] (!%p209_p3)  ;;  %v267_v11 = vld [vmem:[%s2330_s1 + $0x8] sm:$0xff] (!%p209_p3)  ;;  %v1813_v40 = vshrl.u32 (!%p209_p3), %v459_v38, 7 }
   0x9   : > { %1219 = vmatprep.mubr.bf16.mxu0 (!%p209_p3), %v2335_v3  ;;  %1259 = vmatprep.mubr.bf16.mxu1 (!%p209_p3), %v2335_v3  ;;  %v1695_v12 = vld [vmem:[%s2330_s1 + $0x60] sm:$0xff] (!%p209_p3)  ;;  %v283_v14 = vld [vmem:[%s2331_s2 + $0x8] sm:$0xff] (!%p209_p3)  ;;  %v269_v15 = vld [vmem:[%s2330_s1 + $0x18] sm:$0xff] (!%p209_p3) }
   0xa   : > { %v282_v13 = vld [vmem:[%s2331_s2] sm:$0xff] (!%p209_p3)  ;;  %v288_v17 = vld [vmem:[%s2331_s2 + $0x30] sm:$0xff] (!%p209_p3)  ;;  %v1729_v21 = vld [vmem:[%s2330_s1 + $0x48] sm:$0xff] (!%p209_p3)  ;;  %v753_v43 = vsub.s32 (!%p209_p3), 2, %v1813_v40  ;;  %v757_v44 = vsub.s32 (!%p209_p3), 6, %v1813_v40  ;;  %v607_v46 = vsub.s32 (!%p209_p3), 1, %v1813_v40 }
   0xb   : > { %v286_v16 = vld [vmem:[%s2331_s2 + $0x20] sm:$0xff] (!%p209_p3)  ;;  %v272_v20 = vld [vmem:[%s2330_s1 + $0x30] sm:$0xff] (!%p209_p3)  ;;  %v293_v23 = vld [vmem:[%s2331_s2 + $0x58] sm:$0xff] (!%p209_p3)  ;;  %v611_v47 = vsub.s32 (!%p209_p3), 5, %v1813_v40  ;;  %v461_v48 = vsub.s32 (!%p209_p3), 0, %v1813_v40  ;;  %v465_v49 = vsub.s32 (!%p209_p3), 4, %v1813_v40 }
   0xc   : > { %315 = vperm.xlu1 (!%p209_p3), %1516, %v285_v4   ;;  %708 = vperm.xlu0 (!%p209_p3), %1523, %v1662_v5   ;;  %v270_v19 = vld [vmem:[%s2330_s1 + $0x20] sm:$0xff] (!%p209_p3)  ;;  %v1744_v24 = vld [vmem:[%s2330_s1 + $0x68] sm:$0xff] (!%p209_p3)  ;;  %v273_v26 = vld [vmem:[%s2330_s1 + $0x38] sm:$0xff] (!%p209_p3) }
   0xd   : > { %v290_v22 = vld [vmem:[%s2331_s2 + $0x40] sm:$0xff] (!%p209_p3)  ;;  %v297_v27 = vld [vmem:[%s2331_s2 + $0x78] sm:$0xff] (!%p209_p3)  ;;  %v291_v29 = vld [vmem:[%s2331_s2 + $0x48] sm:$0xff] (!%p209_p3) }
   0xe   : > { %v294_v25 = vld [vmem:[%s2331_s2 + $0x60] sm:$0xff]  ;;  %v1768_v28 = vld [vmem:[%s2330_s1 + $0x58] sm:$0xff]  ;;  %v1792_v33 = vld [vmem:[%s2330_s1 + $0x50] sm:$0xff]  ;;  %s2343_s18 = smov (!%p245_p4, %s1581_s18), 1 }
   0xf   : > { %v1782_v30 = vld [vmem:[%s2330_s1 + $0x78] sm:$0xff]  ;;  %s1470_s11 = sshll.u32 %s2343_s18, 3  ;;  %v292_v42 = vld [vmem:[%s2331_s2 + $0x50] sm:$0xff]  ;;  %s1471_s8 = sshll.u32 %s2343_s18, 8 }
  0x10   : > { %325 = vperm.xlu1 %1516, %v287_v6   ;;  %720 = vperm.xlu0 %1523, %v1673_v7   ;;  %s252_s14 = scalar_lea.vmem %s2329_s0, %s1470_s11  ;;  %s2278_s11 = scalar_lea.vmem %s2334_s5, %s1471_s8 }
  0x11   : > { %v1833_v51 = vld [vmem:[%s252_s14] sm:$0xff] }
  0x12   : > { %v754_v52 = vrot.slane %v1833_v51, %v753_v43  ;;  %v758_v53 = vrot.slane %v1833_v51, %v757_v44  ;;  %v608_v54 = vrot.slane %v1833_v51, %v607_v46  ;;  %v612_v55 = vrot.slane %v1833_v51, %v611_v47 }
  0x13   : > { %v462_v56 = vrot.slane %v1833_v51, %v461_v48  ;;  %v466_v57 = vrot.slane %v1833_v51, %v465_v49 }
  0x14   : > { %335 = vperm.xlu1 %1516, %v289_v8   ;;  %1537 = vset.pattern.permute.xlu0 %v1593_v10  ;;  %v1845_v60 = vrot.slane %v754_v52, %v753_v43  ;;  %v1847_v61 = vrot.slane %v758_v53, %v753_v43  ;;  %v1849_v62 = vrot.slane %v608_v54, %v607_v46 }
  0x15   : > { %542 = vperm.xlu0 %1537, %v266_v9   ;;  %v1851_v63 = vrot.slane %v612_v55, %v607_v46  ;;  %v1853_v0 = vrot.slane %v462_v56, %v461_v48 }
  0x18   : > { %385 = vperm.xlu1 %1516, %v267_v11  }
  0x19   : > { %550 = vperm.xlu0 %1537, %v1651_v1  }
  0x1c   : > { %1517 = vset.pattern.permute.xlu1 %v1593_v10 }
  0x1d   : > { %546 = vperm.xlu1 %1517, %v267_v11   ;;  %562 = vperm.xlu0 %1537, %v1662_v5  }
  0x21   : > { %1518 = vset.pattern.permute.xlu1 %v2335_v3  ;;  %574 = vperm.xlu0 %1537, %v1673_v7  }
  0x22   : > { %390 = vperm.xlu1 %1518, %v1651_v1  }
  0x25   : > { %590 = vperm.xlu0 %1537, %v1695_v12  }
  0x26   : > { %1519 = vset.pattern.permute.xlu1 %v1591_v2 }
  0x27   : > { %688 = vperm.xlu1 %1519, %v266_v9  }
  0x29   : > { %1545 = vset.pattern.permute.xlu0 %v2335_v3 }
  0x2a   : > { %300 = vperm.xlu0 %1545, %v282_v13  }
  0x2b   : > { %692 = vperm.xlu1 %1519, %v267_v11  }
  0x2e   : > { %305 = vperm.xlu0 %1545, %v283_v14  }
  0x2f   : > { %1520 = vset.pattern.permute.xlu1 %v1593_v10 }
  0x30   : > { %554 = vperm.xlu1 %1520, %v269_v15  }
  0x32   : > { %320 = vperm.xlu0 %1545, %v286_v16  }
  0x34   : > { %1521 = vset.pattern.permute.xlu1 %v1594_v18 }
  0x35   : > { %834 = vperm.xlu1 %1521, %v266_v9  }
  0x36   : > { %330 = vperm.xlu0 %1545, %v288_v17  }
  0x39   : > { %1522 = vset.pattern.permute.xlu1 %v2335_v3 }
  0x3a   : > { %380 = vperm.xlu0 %1545, %v266_v9   ;;  %400 = vperm.xlu1 %1522, %v270_v19  }
  0x3e   : > { %395 = vperm.xlu0 %1545, %v269_v15   ;;  %405 = vperm.xlu1 %1522, %v1662_v5  }
  0x42   : > { %410 = vperm.xlu0 %1545, %v272_v20   ;;  %1524 = vset.pattern.permute.xlu1 %v1591_v2 }
  0x43   : > { %700 = vperm.xlu1 %1524, %v269_v15  }
  0x46   : > { %425 = vperm.xlu0 %1545, %v1729_v21  }
  0x47   : > { %1525 = vset.pattern.permute.xlu1 %v1593_v10 }
  0x48   : > { %558 = vperm.xlu1 %1525, %v270_v19  }
  0x4a   : > { %340 = vperm.xlu0 %1545, %v290_v22  }
  0x4c   : > { %1526 = vset.pattern.permute.xlu1 %v1594_v18 }
  0x4d   : > { %842 = vperm.xlu1 %1526, %v1651_v1   ;;  %v1855_v1 = vrot.slane %v466_v57, %v461_v48 }
  0x4e   : > { %355 = vperm.xlu0 %1545, %v293_v23  }
  0x51   : > { %846 = vperm.xlu1 %1526, %v269_v15  }
  0x52   : > { %445 = vperm.xlu0 %1545, %v1744_v24  }
  0x55   : > { %1527 = vset.pattern.permute.xlu1 %v2335_v3 }
  0x56   : > { %360 = vperm.xlu0 %1545, %v294_v25   ;;  %415 = vperm.xlu1 %1527, %v273_v26  }
  0x5a   : > { %375 = vperm.xlu0 %1545, %v297_v27   ;;  %1528 = vset.pattern.permute.xlu1 %v1591_v2 }
  0x5b   : > { %704 = vperm.xlu1 %1528, %v270_v19  }
  0x5e   : > { %1551 = vset.pattern.permute.xlu0 %v1594_v18 }
  0x5f   : > { %838 = vperm.xlu0 %1551, %v267_v11   ;;  %1529 = vset.pattern.permute.xlu1 %v1593_v10 }
  0x60   : > { %566 = vperm.xlu1 %1529, %v272_v20  }
  0x63   : > { %850 = vperm.xlu0 %1551, %v270_v19  }
  0x64   : > { %570 = vperm.xlu1 %1529, %v273_v26  }
  0x67   : > { %862 = vperm.xlu0 %1551, %v273_v26  }
  0x68   : > { %1530 = vset.pattern.permute.xlu1 %v1594_v18 }
  0x69   : > { %854 = vperm.xlu1 %1530, %v1662_v5  }
  0x6b   : > { %866 = vperm.xlu0 %1551, %v1673_v7  }
  0x6d   : > { %1531 = vset.pattern.permute.xlu1 %v2335_v3 }
  0x6e   : > { %420 = vperm.xlu1 %1531, %v1673_v7  }
  0x6f   : > { %878 = vperm.xlu0 %1551, %v1768_v28  }
  0x72   : > { %1532 = vset.pattern.permute.xlu1 %v1591_v2 }
  0x73   : > { %712 = vperm.xlu1 %1532, %v272_v20   ;;  %882 = vperm.xlu0 %1551, %v1695_v12  }
  0x77   : > { %716 = vperm.xlu1 %1532, %v273_v26   ;;  %1553 = vset.pattern.permute.xlu0 %v1591_v2 }
  0x78   : > { %736 = vperm.xlu0 %1553, %v1695_v12  }
  0x7b   : > { %1533 = vset.pattern.permute.xlu1 %v2335_v3 }
  0x7c   : > { %345 = vperm.xlu1 %1533, %v291_v29   ;;  %748 = vperm.xlu0 %1553, %v1782_v30  }
  0x80   : > { %1534 = vset.pattern.permute.xlu1 %v1593_v10  ;;  %1557 = vset.pattern.permute.xlu0 %v2335_v3 }
  0x81   : > { %578 = vperm.xlu1 %1534, %v1729_v21  }
  0x85   : > { %1535 = vset.pattern.permute.xlu1 %v1594_v18 }
  0x86   : > { %858 = vperm.xlu1 %1535, %v272_v20  }
  0x87   : > { %v311_v31 = vpop.permute.xlu1 %310  ;;  %v697_v32 = vpop.permute.xlu0 %696 }
  0x88   : > { %v773_v11 = vmul.f32 %v1845_v60, %v697_v32  ;;  %v774_v13 = vmul.f32 %v1847_v61, %v697_v32 }
  0x8a   : > { %1536 = vset.pattern.permute.xlu1 %v2335_v3 }
  0x8b   : > { %v1796_v34 = vpop.permute.xlu1 %315  ;;  %430 = vperm.xlu1 %1536, %v1792_v33   ;;  %v1799_v35 = vpop.permute.xlu0 %708 }
  0x8c   : > { %v779_v49 = vmul.f32 %v1845_v60, %v1799_v35 }
  0x8f   : > { %v1804_v36 = vpop.permute.xlu1 %325  ;;  %435 = vperm.xlu1 %1536, %v1768_v28   ;;  %v1807_v37 = vpop.permute.xlu0 %720 }
  0x93   : > { %v1810_v39 = vpop.permute.xlu1 %335  ;;  %1538 = vset.pattern.permute.xlu1 %v1591_v2 }
  0x94   : > { %724 = vperm.xlu1 %1538, %v1729_v21   ;;  %v1816_v41 = vpop.permute.xlu0 %542 }
  0x97   : > { %v1826_v45 = vpop.permute.xlu1 %385 }
  0x98   : > { %1539 = vset.pattern.permute.xlu1 %v2335_v3  ;;  %v551_v50 = vpop.permute.xlu0 %550 }
  0x99   : > { %350 = vperm.xlu1 %1539, %v292_v42   ;;  %v627_v6 = vmul.f32 %v1849_v62, %v551_v50  ;;  %v628_v7 = vmul.f32 %v1851_v63, %v551_v50  ;;  %v780_v50 = vmul.f32 %v1847_v61, %v1799_v35  ;;  %v1926_v35 = vld [vmem:[%s2330_s1 + $0x70] sm:$0xff] }
  0x9c   : > { %v1841_v58 = vpop.permute.xlu1 %546  ;;  %v563_v59 = vpop.permute.xlu0 %562 }
  0x9d   : > { %1540 = vset.pattern.permute.xlu1 %v1593_v10  ;;  %v633_v46 = vmul.f32 %v1849_v62, %v563_v59  ;;  %v634_v47 = vmul.f32 %v1851_v63, %v563_v59 }
  0x9e   : > { %582 = vperm.xlu1 %1540, %v1792_v33  }
  0xa0   : > { %v1857_v4 = vpop.permute.xlu0 %574 }
  0xa1   : > { %v391_v5 = vpop.permute.xlu1 %390 }
  0xa2   : > { %v481_v8 = vmul.f32 %v1853_v0, %v391_v5  ;;  %v482_v9 = vmul.f32 %v1855_v1, %v391_v5  ;;  %586 = vperm.xlu1 %1540, %v1768_v28  }
  0xa4   : > { %v513_v14 = vadd.f32 %v481_v8, %v311_v31  ;;  %v514_v15 = vadd.f32 %v482_v9, %v311_v31  ;;  %v1866_v16 = vpop.permute.xlu0 %590 }
  0xa6   : > { %v659_v17 = vadd.f32 %v627_v6, %v513_v14  ;;  %v660_v19 = vadd.f32 %v628_v7, %v514_v15  ;;  %1541 = vset.pattern.permute.xlu1 %v1594_v18  ;;  %v1869_v20 = vpop.permute.xlu1 %688  ;;  %v903_v14 = vsub.s32 7, %v1813_v40 }
  0xa7   : > { %870 = vperm.xlu1 %1541, %v1729_v21  }
  0xa8   : > { %v1872_v22 = vadd.f32 %v773_v11, %v659_v17  ;;  %v1874_v23 = vadd.f32 %v774_v13, %v660_v19  ;;  %v899_v13 = vsub.s32 3, %v1813_v40  ;;  %v479_v40 = vmul.f32 %v1853_v0, %v1826_v45 }
  0xa9   : > { %v301_v25 = vpop.permute.xlu0 %300 }
  0xaa   : > { %v1876_v26 = vpop.permute.xlu1 %692 }
  0xab   : > { %1542 = vset.pattern.permute.xlu1 %v2335_v3 }
  0xac   : > { %440 = vperm.xlu1 %1542, %v1695_v12   ;;  %v295_v12 = vld [vmem:[%s2331_s2 + $0x68] sm:$0xff] }
  0xad   : > { %v1880_v27 = vpop.permute.xlu0 %305 }
  0xaf   : > { %v1882_v29 = vpop.permute.xlu1 %554 }
  0xb0   : > { %1543 = vset.pattern.permute.xlu1 %v1591_v2 }
  0xb1   : > { %v1885_v31 = vpop.permute.xlu0 %320  ;;  %728 = vperm.xlu1 %1543, %v1792_v33  }
  0xb4   : > { %v1888_v21 = vpop.permute.xlu1 %834 }
  0xb5   : > { %v1890_v32 = vpop.permute.xlu0 %330  ;;  %732 = vperm.xlu1 %1543, %v1768_v28  }
  0xb9   : > { %v381_v38 = vpop.permute.xlu0 %380  ;;  %1544 = vset.pattern.permute.xlu1 %v2335_v3  ;;  %v1897_v42 = vpop.permute.xlu1 %400 }
  0xba   : > { %365 = vperm.xlu1 %1544, %v295_v12   ;;  %v477_v9 = vmul.f32 %v1853_v0, %v381_v38  ;;  %v478_v11 = vmul.f32 %v1855_v1, %v381_v38  ;;  %v623_v12 = vmul.f32 %v1849_v62, %v1816_v41  ;;  %v900_v38 = vrot.slane %v1833_v51, %v899_v13 }
  0xbd   : > { %v396_v43 = vpop.permute.xlu0 %395  ;;  %v406_v44 = vpop.permute.xlu1 %405 }
  0xbe   : > { %1546 = vset.pattern.permute.xlu1 %v1593_v10  ;;  %v487_v28 = vmul.f32 %v1853_v0, %v406_v44  ;;  %v488_v48 = vmul.f32 %v1855_v1, %v406_v44  ;;  %v484_v17 = vmul.f32 %v1855_v1, %v396_v43  ;;  %v624_v44 = vmul.f32 %v1851_v63, %v1816_v41  ;;  %v296_v41 = vld [vmem:[%s2331_s2 + $0x70] sm:$0xff] }
  0xbf   : > { %594 = vperm.xlu1 %1546, %v1744_v24  }
  0xc0   : > { %v519_v52 = vadd.f32 %v487_v28, %v1804_v36  ;;  %v520_v53 = vadd.f32 %v488_v48, %v1804_v36  ;;  %v904_v28 = vrot.slane %v1833_v51, %v903_v14  ;;  %v480_v48 = vmul.f32 %v1855_v1, %v1826_v45 }
  0xc1   : > { %v1911_v54 = vpop.permute.xlu0 %410  ;;  %v625_v45 = vmul.f32 %v1849_v62, %v1841_v58  ;;  %v626_v14 = vmul.f32 %v1851_v63, %v1841_v58 }
  0xc2   : > { %v1913_v55 = vpop.permute.xlu1 %700  ;;  %v665_v56 = vadd.f32 %v633_v46, %v519_v52  ;;  %v666_v57 = vadd.f32 %v634_v47, %v520_v53  ;;  %v509_v46 = vadd.f32 %v477_v9, %v301_v25  ;;  %v510_v47 = vadd.f32 %v478_v11, %v301_v25 }
  0xc3   : > { %1547 = vset.pattern.permute.xlu1 %v1594_v18  ;;  %v511_v25 = vadd.f32 %v479_v40, %v1880_v27  ;;  %v1974_v9 = vrot.slane %v900_v38, %v899_v13  ;;  %v1976_v11 = vrot.slane %v904_v28, %v899_v13  ;;  %v629_v38 = vmul.f32 %v1849_v62, %v1882_v29 }
  0xc4   : > { %874 = vperm.xlu1 %1547, %v1792_v33   ;;  %v1919_v5 = vadd.f32 %v779_v49, %v665_v56  ;;  %v1921_v6 = vadd.f32 %v780_v50, %v666_v57  ;;  %v483_v49 = vmul.f32 %v1853_v0, %v396_v43  ;;  %v516_v50 = vadd.f32 %v484_v17, %v1796_v34 }
  0xc5   : > { %v1917_v59 = vpop.permute.xlu0 %425  ;;  %v512_v56 = vadd.f32 %v480_v48, %v1880_v27  ;;  %v655_v51 = vadd.f32 %v623_v12, %v509_v46  ;;  %v656_v57 = vadd.f32 %v624_v44, %v510_v47  ;;  %v630_v43 = vmul.f32 %v1851_v63, %v1882_v29 }
  0xc6   : > { %v769_v27 = vmul.f32 %v1845_v60, %v1869_v20  ;;  %v770_v17 = vmul.f32 %v1847_v61, %v1869_v20  ;;  %v515_v12 = vadd.f32 %v483_v49, %v1796_v34  ;;  %v657_v44 = vadd.f32 %v625_v45, %v511_v25 }
  0xc7   : > { %v1928_v36 = vpop.permute.xlu1 %558  ;;  %v662_v46 = vadd.f32 %v630_v43, %v516_v50  ;;  %v776_v47 = vmul.f32 %v1847_v61, %v1913_v55  ;;  %v658_v13 = vadd.f32 %v626_v14, %v512_v56  ;;  %v772_v34 = vmul.f32 %v1847_v61, %v1876_v26 }
  0xc8   : > { %1548 = vset.pattern.permute.xlu1 %v2335_v3  ;;  %v802_v28 = vadd.f32 %v770_v17, %v656_v57  ;;  %v801_v48 = vadd.f32 %v769_v27, %v655_v51  ;;  %v485_v20 = vmul.f32 %v1853_v0, %v1897_v42  ;;  %v915_v25 = vmul.f32 %v1974_v9, %v1888_v21 }
  0xc9   : > { %450 = vperm.xlu1 %1548, %v1926_v35   ;;  %v1932_v7 = vpop.permute.xlu0 %340  ;;  %v916_v29 = vmul.f32 %v1976_v11, %v1888_v21  ;;  %v661_v50 = vadd.f32 %v629_v38, %v515_v12  ;;  %v775_v56 = vmul.f32 %v1845_v60, %v1913_v55  ;;  %v808_v51 = vadd.f32 %v776_v47, %v662_v46 }
  0xca   : > { %v804_v14 = vadd.f32 %v772_v34, %v658_v13  ;;  %v947_v21 = vadd.f32 %v915_v25, %v801_v48  ;;  %v517_v17 = vadd.f32 %v485_v20, %v1885_v31  ;;  %v631_v46 = vmul.f32 %v1849_v62, %v1928_v36 }
  0xcb   : > { %v948_v27 = vadd.f32 %v916_v29, %v802_v28 }
  0xcc   : > { %v1934_v33 = vpop.permute.xlu1 %842  ;;  %v979_v25 = vmax.f32 %v947_v21, 0.0 }
  0xcd   : > { %455 = vperm.xlu1 %1548, %v1782_v30   ;;  %v1937_v8 = vpop.permute.xlu0 %355  ;;  %v920_v57 = vmul.f32 %v1976_v11, %v1934_v33 }
  0xcf   : > { %v952_v13 = vadd.f32 %v920_v57, %v1874_v23 }
  0xd0   : > { %v847_v15 = vpop.permute.xlu1 %846 }
  0xd1   : > { %1549 = vset.pattern.permute.xlu1 %v1591_v2  ;;  %v1945_v19 = vpop.permute.xlu0 %445  ;;  %v922_v49 = vmul.f32 %v1976_v11, %v847_v15  ;;  %v921_v45 = vmul.f32 %v1974_v9, %v847_v15  ;;  %v632_v15 = vmul.f32 %v1851_v63, %v1928_v36 }
  0xd2   : > { %740 = vperm.xlu1 %1549, %v1744_v24  }
  0xd3   : > { %v954_v12 = vadd.f32 %v922_v49, %v808_v51  ;;  %v980_v49 = vmax.f32 %v948_v27, 0.0  ;;  %v663_v51 = vadd.f32 %v631_v46, %v517_v17 }
  0xd5   : > { %v1964_v52 = vpop.permute.xlu1 %415  ;;  %v1966_v53 = vpop.permute.xlu0 %360  ;;  %v986_v29 = vmax.f32 %v954_v12, 0.0 }
  0xd6   : > { %1550 = vset.pattern.permute.xlu1 %v2335_v3 }
  0xd7   : > { %370 = vperm.xlu1 %1550, %v296_v41   ;;  %v771_v41 = vmul.f32 %v1845_v60, %v1876_v26  ;;  %v486_v26 = vmul.f32 %v1855_v1, %v1897_v42  ;;  %v807_v42 = vadd.f32 %v775_v56, %v661_v50 }
  0xd9   : > { %v1987_v40 = vpop.permute.xlu0 %375  ;;  %v518_v47 = vadd.f32 %v486_v26, %v1885_v31  ;;  %v984_v26 = vmax.f32 %v952_v13, 0.0 }
  0xda   : > { %v705_v58 = vpop.permute.xlu1 %704 }
  0xdb   : > { %1552 = vset.pattern.permute.xlu1 %v1593_v10  ;;  %v803_v10 = vadd.f32 %v771_v41, %v657_v44  ;;  %v919_v44 = vmul.f32 %v1974_v9, %v1934_v33  ;;  %v953_v41 = vadd.f32 %v921_v45, %v807_v42  ;;  %v777_v34 = vmul.f32 %v1845_v60, %v705_v58 }
  0xdc   : > { %598 = vperm.xlu1 %1552, %v1926_v35   ;;  %v778_v36 = vmul.f32 %v1847_v61, %v705_v58  ;;  %v1014_v21 = vpack.c.bf16 %v986_v29, %v984_v26 }
  0xdd   : > { %v951_v31 = vadd.f32 %v919_v44, %v1872_v22  ;;  %v985_v58 = vmax.f32 %v953_v41, 0.0  ;;  %v639_v41 = vmul.f32 %v1849_v62, %v1857_v4 }
  0xde   : > { %v839_v43 = vpop.permute.xlu0 %838 }
  0xdf   : > { %v917_v55 = vmul.f32 %v1974_v9, %v839_v43  ;;  %v918_v38 = vmul.f32 %v1976_v11, %v839_v43  ;;  %v2014_v3 = vpop.permute.xlu1 %566  ;;  %v664_v43 = vadd.f32 %v632_v15, %v518_v47  ;;  %v983_v17 = vmax.f32 %v951_v31, 0.0 }
  0xe0   : > { %602 = vperm.xlu1 %1552, %v1782_v30   ;;  %v489_v31 = vmul.f32 %v1853_v0, %v1911_v54 }
  0xe1   : > { %v949_v28 = vadd.f32 %v917_v55, %v803_v10  ;;  %v950_v48 = vadd.f32 %v918_v38, %v804_v14  ;;  %v809_v14 = vadd.f32 %v777_v34, %v663_v51  ;;  %v810_v27 = vadd.f32 %v778_v36, %v664_v43 }
  0xe2   : > { %v851_v20 = vpop.permute.xlu0 %850  ;;  %v2337_v43 = vmov 0  }
  0xe3   : > { %v2027_v50 = vpop.permute.xlu1 %570  ;;  %v982_v33 = vmax.f32 %v950_v48, 0.0  ;;  %v981_v56 = vmax.f32 %v949_v28, 0.0  ;;  %v923_v23 = vmul.f32 %v1974_v9, %v851_v20  ;;  %v924_v57 = vmul.f32 %v1976_v11, %v851_v20 }
  0xe4   : > { %1554 = vset.pattern.permute.xlu1 %v1594_v18  ;;  %v637_v26 = vmul.f32 %v1849_v62, %v2027_v50 }
  0xe5   : > { %886 = vperm.xlu1 %1554, %v1744_v24   ;;  %v1012_v10 = vpack.c.bf16 %v982_v33, %v980_v49  ;;  %v1011_v45 = vpack.c.bf16 %v981_v56, %v979_v25  ;;  %v955_v12 = vadd.f32 %v923_v23, %v809_v14  ;;  %v956_v55 = vadd.f32 %v924_v57, %v810_v27 }
  0xe6   : > { %v1013_v24 = vpack.c.bf16 %v985_v58, %v983_v17  ;;  %v785_v49 = vmul.f32 %v1845_v60, %v1807_v37  ;;  %v786_v25 = vmul.f32 %v1847_v61, %v1807_v37  ;;  %v491_v37 = vmul.f32 %v1853_v0, %v1964_v52 }
  0xe7   : > { %1187 = vmatprep.subr.bf16.mxu0 %v1012_v10  ;;  %1472 = vmatprep.subr.bf16.mxu1 %v1012_v10  ;;  %v987_v44 = vmax.f32 %v955_v12, 0.0  ;;  %v988_v47 = vmax.f32 %v956_v55, 0.0  ;;  %v490_v23 = vmul.f32 %v1855_v1, %v1911_v54  ;;  %v638_v57 = vmul.f32 %v1851_v63, %v2027_v50 }
  0xe8   : > { %v855_v22 = vpop.permute.xlu1 %854  ;;  %1188 = vmatpush1.bf16.msra.mxu0 %v1011_v45  ;;  %1480 = vmatpush1.bf16.msra.mxu1 %v1011_v45  ;;  %v523_v10 = vadd.f32 %v491_v37, %v1810_v39  ;;  %v521_v14 = vadd.f32 %v489_v31, %v1890_v32  ;;  %v635_v27 = vmul.f32 %v1849_v62, %v2014_v3  ;;  %v1045_v31 = vld [vmem:[%s2333_s4 + $0x10] sm:$0xff] }
  0xe9   : > { %v925_v38 = vmul.f32 %v1974_v9, %v855_v22  ;;  %v926_v42 = vmul.f32 %v1976_v11, %v855_v22  ;;  %1555 = vset.pattern.permute.xlu1 %v1591_v2  ;;  %1189 = vmatprep.subr.bf16.mxu0 %v1014_v21  ;;  %v640_v2 = vmul.f32 %v1851_v63, %v1857_v4  ;;  %v863_v22 = vpop.permute.xlu0 %862 }
  0xea   : > { %1473 = vmatprep.subr.bf16.mxu1 %v1014_v21  ;;  %744 = vperm.xlu1 %1555, %v1926_v35   ;;  %v522_v54 = vadd.f32 %v490_v23, %v1890_v32  ;;  %v636_v21 = vmul.f32 %v1851_v63, %v2014_v3  ;;  %v669_v17 = vadd.f32 %v637_v26, %v523_v10  ;;  %v1048_v26 = vld [vmem:[%s2333_s4 + $0x28] sm:$0xff] }
  0xeb   : > { %v957_v46 = vadd.f32 %v925_v38, %v1919_v5  ;;  %v958_v15 = vadd.f32 %v926_v42, %v1921_v6  ;;  %v929_v38 = vmul.f32 %v1974_v9, %v863_v22  ;;  %v930_v42 = vmul.f32 %v1976_v11, %v863_v22 }
  0xec   : > { %1190 = vmatpush1.bf16.msra.mxu0 %v1013_v24  ;;  %1481 = vmatpush1.bf16.msra.mxu1 %v1013_v24  ;;  %v495_v10 = vmul.f32 %v1853_v0, %v1917_v59 }
  0xed   : > { %v989_v13 = vmax.f32 %v957_v46, 0.0  ;;  %v990_v28 = vmax.f32 %v958_v15, 0.0  ;;  %v421_v48 = vpop.permute.xlu1 %420  ;;  %v667_v46 = vadd.f32 %v635_v27, %v521_v14  ;;  %v668_v15 = vadd.f32 %v636_v21, %v522_v54  ;;  %v1050_v27 = vld [vmem:[%s2333_s4 + $0x38] sm:$0xff]  ;;  %v1049_v21 = vld [vmem:[%s2333_s4 + $0x30] sm:$0xff] }
  0xee   : > { %v493_v34 = vmul.f32 %v1853_v0, %v421_v48  ;;  %v494_v20 = vmul.f32 %v1855_v1, %v421_v48  ;;  %1556 = vset.pattern.permute.xlu1 %v1594_v18 }
  0xef   : > { %890 = vperm.xlu1 %1556, %v1926_v35   ;;  %v1016_v5 = vpack.c.bf16 %v990_v28, %v988_v47  ;;  %v1015_v6 = vpack.c.bf16 %v989_v13, %v987_v44 }
  0xf0   : > { %v525_v29 = vadd.f32 %v493_v34, %v1932_v7  ;;  %v526_v4 = vadd.f32 %v494_v20, %v1932_v7  ;;  %v492_v7 = vmul.f32 %v1855_v1, %v1964_v52 }
  0xf1   : > { %1191 = vmatprep.subr.bf16.mxu0 %v1016_v5  ;;  %1474 = vmatprep.subr.bf16.mxu1 %v1016_v5 }
  0xf2   : > { %v671_v36 = vadd.f32 %v639_v41, %v525_v29  ;;  %v672_v33 = vadd.f32 %v640_v2, %v526_v4  ;;  %v713_v56 = vpop.permute.xlu1 %712  ;;  %1192 = vmatpush1.bf16.msra.mxu0 %v1015_v6  ;;  %1482 = vmatpush1.bf16.msra.mxu1 %v1015_v6  ;;  %v524_v45 = vadd.f32 %v492_v7, %v1810_v39  ;;  %v1046_v7 = vld [vmem:[%s2333_s4 + $0x18] sm:$0xff] }
  0xf3   : > { %894 = vperm.xlu1 %1556, %v1782_v30   ;;  %v781_v39 = vmul.f32 %v1845_v60, %v713_v56  ;;  %v782_v55 = vmul.f32 %v1847_v61, %v713_v56  ;;  %v1043_v56 = vld [vmem:[%s2333_s4] sm:$0xff] }
  0xf4   : > { %v2055_v18 = vadd.f32 %v785_v49, %v671_v36  ;;  %v2057_v35 = vadd.f32 %v786_v25, %v672_v33  ;;  %v670_v50 = vadd.f32 %v638_v57, %v524_v45  ;;  %1061 = vperm.xlu0 %1557, %v1043_v56   ;;  %v1047_v57 = vld [vmem:[%s2333_s4 + $0x20] sm:$0xff]  ;;  %v496_v45 = vmul.f32 %v1855_v1, %v1917_v59  ;;  %v1057_v56 = vld [vmem:[%s2333_s4 + $0x70] sm:$0xff] }
  0xf5   : > { %v813_v44 = vadd.f32 %v781_v39, %v667_v46  ;;  %v814_v47 = vadd.f32 %v782_v55, %v668_v15 }
  0xf6   : > { %v717_v51 = vpop.permute.xlu1 %716 }
  0xf7   : > { %1558 = vset.pattern.permute.xlu1 %v2337_v43  ;;  %v783_v52 = vmul.f32 %v1845_v60, %v717_v51  ;;  %v784_v58 = vmul.f32 %v1847_v61, %v717_v51  ;;  %v1044_v51 = vld [vmem:[%s2333_s4 + $0x8] sm:$0xff] }
  0xf8   : > { %1066 = vperm.xlu1 %1558, %v1044_v51   ;;  %1076 = vperm.xlu0 %1557, %v1046_v7  }
  0xf9   : > { %v815_v24 = vadd.f32 %v783_v52, %v669_v17  ;;  %v816_v32 = vadd.f32 %v784_v58, %v670_v50  ;;  %v867_v52 = vpop.permute.xlu0 %866 }
  0xfa   : > { %v931_v17 = vmul.f32 %v1974_v9, %v867_v52  ;;  %v932_v59 = vmul.f32 %v1976_v11, %v867_v52 }
  0xfb   : > { %v2068_v30 = vpop.permute.xlu1 %345  ;;  %v961_v3 = vadd.f32 %v929_v38, %v815_v24  ;;  %v962_v28 = vadd.f32 %v930_v42, %v816_v32  ;;  %v1052_v42 = vld [vmem:[%s2333_s4 + $0x48] sm:$0xff]  ;;  %v1051_v24 = vld [vmem:[%s2333_s4 + $0x40] sm:$0xff] }
  0xfc   : > { %1071 = vperm.xlu1 %1558, %v1045_v31   ;;  %1086 = vperm.xlu0 %1557, %v1048_v26   ;;  %v527_v50 = vadd.f32 %v495_v10, %v2068_v30  ;;  %v528_v22 = vadd.f32 %v496_v45, %v2068_v30  ;;  %v963_v32 = vadd.f32 %v931_v17, %v2055_v18  ;;  %v1053_v18 = vld [vmem:[%s2333_s4 + $0x50] sm:$0xff] }
  0xfd   : > { %v994_v49 = vmax.f32 %v962_v28, 0.0  ;;  %v993_v25 = vmax.f32 %v961_v3, 0.0  ;;  %v964_v30 = vadd.f32 %v932_v59, %v2057_v35 }
  0xfe   : > { %v995_v35 = vmax.f32 %v963_v32, 0.0 }
 0x100   : > { %v579_v12 = vpop.permute.xlu1 %578  ;;  %1081 = vperm.xlu1 %1558, %v1047_v57   ;;  %1096 = vperm.xlu0 %1557, %v1050_v27  }
 0x101   : > { %v641_v58 = vmul.f32 %v1849_v62, %v579_v12  ;;  %v642_v14 = vmul.f32 %v1851_v63, %v579_v12 }
 0x103   : > { %v673_v55 = vadd.f32 %v641_v58, %v527_v50  ;;  %v674_v38 = vadd.f32 %v642_v14, %v528_v22 }
 0x104   : > { %1091 = vperm.xlu1 %1558, %v1049_v21   ;;  %1106 = vperm.xlu0 %1557, %v1052_v42  }
 0x105   : > { %v859_v13 = vpop.permute.xlu1 %858 }
 0x106   : > { %v927_v48 = vmul.f32 %v1974_v9, %v859_v13  ;;  %v928_v41 = vmul.f32 %v1976_v11, %v859_v13 }
 0x108   : > { %v959_v2 = vadd.f32 %v927_v48, %v813_v44  ;;  %v960_v34 = vadd.f32 %v928_v41, %v814_v47  ;;  %1101 = vperm.xlu1 %1558, %v1051_v24   ;;  %v1054_v48 = vld [vmem:[%s2333_s4 + $0x58] sm:$0xff]  ;;  %v996_v41 = vmax.f32 %v964_v30, 0.0 }
 0x109   : > { %1116 = vperm.xlu0 %1557, %v1054_v48  }
 0x10a   : > { %v991_v20 = vmax.f32 %v959_v2, 0.0  ;;  %v992_v5 = vmax.f32 %v960_v34, 0.0  ;;  %v2090_v6 = vpop.permute.xlu1 %430 }
 0x10b   : > { %v497_v27 = vmul.f32 %v1853_v0, %v2090_v6 }
 0x10c   : > { %v1018_v29 = vpack.c.bf16 %v994_v49, %v992_v5  ;;  %v1017_v4 = vpack.c.bf16 %v993_v25, %v991_v20  ;;  %1111 = vperm.xlu1 %1558, %v1053_v18   ;;  %v1056_v25 = vld [vmem:[%s2333_s4 + $0x68] sm:$0xff] }
 0x10d   : > { %1126 = vperm.xlu0 %1557, %v1056_v25  }
 0x10e   : > { %v2092_v36 = vpop.permute.xlu1 %435  ;;  %1193 = vmatprep.subr.bf16.mxu0 %v1018_v29  ;;  %1475 = vmatprep.subr.bf16.mxu1 %v1018_v29  ;;  %v1055_v29 = vld [vmem:[%s2333_s4 + $0x60] sm:$0xff] }
 0x10f   : > { %1194 = vmatpush1.bf16.msra.mxu0 %v1017_v4  ;;  %1483 = vmatpush1.bf16.msra.mxu1 %v1017_v4  ;;  %v499_v7 = vmul.f32 %v1853_v0, %v2092_v36  ;;  %v500_v31 = vmul.f32 %v1855_v1, %v2092_v36  ;;  %v498_v36 = vmul.f32 %v1855_v1, %v2090_v6 }
 0x110   : > { %1121 = vperm.xlu1 %1558, %v1055_v29  }
 0x111   : > { %v531_v45 = vadd.f32 %v499_v7, %v1937_v8  ;;  %v532_v52 = vadd.f32 %v500_v31, %v1937_v8 }
 0x113   : > { %v725_v33 = vpop.permute.xlu1 %724 }
 0x114   : > { %v787_v39 = vmul.f32 %v1845_v60, %v725_v33  ;;  %v788_v12 = vmul.f32 %v1847_v61, %v725_v33  ;;  %v1058_v33 = vld [vmem:[%s2333_s4 + $0x78] sm:$0xff]  ;;  %1131 = vperm.xlu1 %1558, %v1057_v56  }
 0x115   : > { %1136 = vperm.xlu0 %1557, %v1058_v33  }
 0x116   : > { %v819_v15 = vadd.f32 %v787_v39, %v673_v55  ;;  %v820_v44 = vadd.f32 %v788_v12, %v674_v38  ;;  %v879_v39 = vpop.permute.xlu0 %878 }
 0x117   : > { %v937_v6 = vmul.f32 %v1974_v9, %v879_v39  ;;  %v938_v38 = vmul.f32 %v1976_v11, %v879_v39 }
 0x118   : > { %v2100_v37 = vpop.permute.xlu1 %350 }
 0x119   : > { %v529_v8 = vadd.f32 %v497_v27, %v2100_v37  ;;  %v530_v22 = vadd.f32 %v498_v36, %v2100_v37 }
 0x11a   : > { %v883_v29 = vpop.permute.xlu0 %882 }
 0x11d   : > { %v2108_v23 = vpop.permute.xlu1 %582 }
 0x11e   : > { %v643_v21 = vmul.f32 %v1849_v62, %v2108_v23  ;;  %v737_v31 = vpop.permute.xlu0 %736 }
 0x11f   : > { %v794_v27 = vmul.f32 %v1847_v61, %v737_v31 }
 0x120   : > { %v675_v32 = vadd.f32 %v643_v21, %v529_v8 }
 0x121   : > { %v587_v54 = vpop.permute.xlu1 %586 }
 0x122   : > { %v645_v57 = vmul.f32 %v1849_v62, %v587_v54  ;;  %v646_v10 = vmul.f32 %v1851_v63, %v587_v54  ;;  %v644_v54 = vmul.f32 %v1851_v63, %v2108_v23 }
 0x124   : > { %v677_v17 = vadd.f32 %v645_v57, %v531_v45  ;;  %v678_v59 = vadd.f32 %v646_v10, %v532_v52  ;;  %v676_v23 = vadd.f32 %v644_v54, %v530_v22  ;;  %v647_v57 = vmul.f32 %v1849_v62, %v1866_v16 }
 0x125   : > { %v648_v10 = vmul.f32 %v1851_v63, %v1866_v16  ;;  %v939_v16 = vmul.f32 %v1974_v9, %v883_v29 }
 0x126   : > { %v871_v46 = vpop.permute.xlu1 %870 }
 0x127   : > { %v933_v47 = vmul.f32 %v1974_v9, %v871_v46  ;;  %v934_v13 = vmul.f32 %v1976_v11, %v871_v46 }
 0x129   : > { %v965_v3 = vadd.f32 %v933_v47, %v819_v15  ;;  %v966_v28 = vadd.f32 %v934_v13, %v820_v44 }
 0x12b   : > { %v997_v2 = vmax.f32 %v965_v3, 0.0  ;;  %v998_v34 = vmax.f32 %v966_v28, 0.0  ;;  %v2150_v20 = vpop.permute.xlu1 %440 }
 0x12c   : > { %v502_v33 = vmul.f32 %v1855_v1, %v2150_v20 }
 0x12d   : > { %v1020_v5 = vpack.c.bf16 %v998_v34, %v996_v41  ;;  %v1019_v49 = vpack.c.bf16 %v997_v2, %v995_v35 }
 0x12e   : > { %v534_v7 = vadd.f32 %v502_v33, %v1966_v53 }
 0x12f   : > { %1195 = vmatprep.subr.bf16.mxu0 %v1020_v5  ;;  %1476 = vmatprep.subr.bf16.mxu1 %v1020_v5 }
 0x130   : > { %v729_v4 = vpop.permute.xlu1 %728  ;;  %1196 = vmatpush1.bf16.msra.mxu0 %v1019_v49  ;;  %1484 = vmatpush1.bf16.msra.mxu1 %v1019_v49 }
 0x131   : > { %v789_v12 = vmul.f32 %v1845_v60, %v729_v4  ;;  %v790_v55 = vmul.f32 %v1847_v61, %v729_v4  ;;  %v501_v4 = vmul.f32 %v1853_v0, %v2150_v20  ;;  %v503_v20 = vmul.f32 %v1853_v0, %v1945_v19 }
 0x133   : > { %v821_v30 = vadd.f32 %v789_v12, %v675_v32  ;;  %v822_v46 = vadd.f32 %v790_v55, %v676_v23 }
 0x134   : > { %v733_v51 = vpop.permute.xlu1 %732 }
 0x135   : > { %v791_v58 = vmul.f32 %v1845_v60, %v733_v51  ;;  %v792_v14 = vmul.f32 %v1847_v61, %v733_v51  ;;  %v533_v51 = vadd.f32 %v501_v4, %v1966_v53  ;;  %v504_v53 = vmul.f32 %v1855_v1, %v1945_v19 }
 0x137   : > { %v823_v42 = vadd.f32 %v791_v58, %v677_v17  ;;  %v824_v24 = vadd.f32 %v792_v14, %v678_v59  ;;  %v679_v52 = vadd.f32 %v647_v57, %v533_v51  ;;  %v680_v58 = vadd.f32 %v648_v10, %v534_v7 }
 0x138   : > { %v793_v14 = vmul.f32 %v1845_v60, %v737_v31  ;;  %v940_v17 = vmul.f32 %v1976_v11, %v883_v29 }
 0x139   : > { %v2168_v26 = vpop.permute.xlu1 %365  ;;  %v969_v44 = vadd.f32 %v937_v6, %v823_v42  ;;  %v970_v47 = vadd.f32 %v938_v38, %v824_v24  ;;  %v826_v8 = vadd.f32 %v794_v27, %v680_v58 }
 0x13a   : > { %v825_v59 = vadd.f32 %v793_v14, %v679_v52  ;;  %v535_v22 = vadd.f32 %v503_v20, %v2168_v26  ;;  %v536_v39 = vadd.f32 %v504_v53, %v2168_v26 }
 0x13b   : > { %v1002_v41 = vmax.f32 %v970_v47, 0.0  ;;  %v1001_v2 = vmax.f32 %v969_v44, 0.0  ;;  %v972_v42 = vadd.f32 %v940_v17, %v826_v8  ;;  %v749_v47 = vpop.permute.xlu0 %748 }
 0x13c   : > { %v971_v38 = vadd.f32 %v939_v16, %v825_v59  ;;  %v799_v7 = vmul.f32 %v1845_v60, %v749_v47 }
 0x13e   : > { %v595_v50 = vpop.permute.xlu1 %594 }
 0x13f   : > { %v649_v36 = vmul.f32 %v1849_v62, %v595_v50  ;;  %v650_v21 = vmul.f32 %v1851_v63, %v595_v50 }
 0x141   : > { %v681_v19 = vadd.f32 %v649_v36, %v535_v22  ;;  %v682_v6 = vadd.f32 %v650_v21, %v536_v39 }
 0x143   : > { %v875_v15 = vpop.permute.xlu1 %874 }
 0x144   : > { %v935_v37 = vmul.f32 %v1974_v9, %v875_v15  ;;  %v936_v13 = vmul.f32 %v1976_v11, %v875_v15 }
 0x146   : > { %v967_v3 = vadd.f32 %v935_v37, %v821_v30  ;;  %v968_v28 = vadd.f32 %v936_v13, %v822_v46 }
 0x148   : > { %v999_v48 = vmax.f32 %v967_v3, 0.0  ;;  %v1000_v18 = vmax.f32 %v968_v28, 0.0  ;;  %v451_v35 = vpop.permute.xlu1 %450  ;;  %v1004_v28 = vmax.f32 %v972_v42, 0.0  ;;  %v1566_v42 = vld [vmem:[%s2332_s3 + $0x38] sm:$0xff]  }
 0x14a   : > { %v1022_v34 = vpack.c.bf16 %v1002_v41, %v1000_v18  ;;  %v1021_v5 = vpack.c.bf16 %v1001_v2, %v999_v48  ;;  %v1003_v48 = vmax.f32 %v971_v38, 0.0  ;;  %v505_v18 = vmul.f32 %v1853_v0, %v451_v35  ;;  %v1565_v38 = vld [vmem:[%s2332_s3 + $0x18] sm:$0xff]  }
 0x14b   : > { %v506_v41 = vmul.f32 %v1855_v1, %v451_v35 }
 0x14c   : > { %v456_v49 = vpop.permute.xlu1 %455  ;;  %1197 = vmatprep.subr.bf16.mxu0 %v1022_v34  ;;  %1477 = vmatprep.subr.bf16.mxu1 %v1022_v34 }
 0x14d   : > { %1198 = vmatpush1.bf16.msra.mxu0 %v1021_v5  ;;  %1485 = vmatpush1.bf16.msra.mxu1 %v1021_v5  ;;  %v507_v44 = vmul.f32 %v1853_v0, %v456_v49  ;;  %v508_v26 = vmul.f32 %v1855_v1, %v456_v49 }
 0x14f   : > { %v539_v4 = vadd.f32 %v507_v44, %v1987_v40  ;;  %v540_v33 = vadd.f32 %v508_v26, %v1987_v40 }
 0x151   : > { %v741_v25 = vpop.permute.xlu1 %740 }
 0x152   : > { %v795_v12 = vmul.f32 %v1845_v60, %v741_v25  ;;  %v796_v55 = vmul.f32 %v1847_v61, %v741_v25 }
 0x154   : > { %v827_v24 = vadd.f32 %v795_v12, %v681_v19  ;;  %v828_v32 = vadd.f32 %v796_v55, %v682_v6  ;;  %v1559_v12 = vld [vmem:[%s2332_s3] sm:$0xff]   ;;  %v1562_v55 = vld [vmem:[%s2332_s3 + $0x28] sm:$0xff]   ;;  %v1563_v19 = vld [vmem:[%s2332_s3 + $0x10] sm:$0xff]  }
 0x155   : > { %v1564_v6 = vld [vmem:[%s2332_s3 + $0x30] sm:$0xff]  }
 0x156   : > { %v371_v56 = vpop.permute.xlu1 %370 }
 0x157   : > { %v537_v51 = vadd.f32 %v505_v18, %v371_v56  ;;  %v538_v0 = vadd.f32 %v506_v41, %v371_v56 }
 0x15b   : > { %v599_v45 = vpop.permute.xlu1 %598 }
 0x15c   : > { %v651_v5 = vmul.f32 %v1849_v62, %v599_v45  ;;  %v652_v25 = vmul.f32 %v1851_v63, %v599_v45 }
 0x15e   : > { %v683_v10 = vadd.f32 %v651_v5, %v537_v51  ;;  %v684_v45 = vadd.f32 %v652_v25, %v538_v0 }
 0x15f   : > { %v603_v54 = vpop.permute.xlu1 %602 }
 0x160   : > { %v653_v2 = vmul.f32 %v1849_v62, %v603_v54  ;;  %v654_v34 = vmul.f32 %v1851_v63, %v603_v54  ;;  %v800_v63 = vmul.f32 %v1847_v61, %v749_v47 }
 0x162   : > { %v685_v31 = vadd.f32 %v653_v2, %v539_v4  ;;  %v686_v62 = vadd.f32 %v654_v34, %v540_v33 }
 0x164   : > { %v887_v50 = vpop.permute.xlu1 %886  ;;  %v832_v14 = vadd.f32 %v800_v63, %v686_v62 }
 0x165   : > { %v941_v23 = vmul.f32 %v1974_v9, %v887_v50  ;;  %v942_v30 = vmul.f32 %v1976_v11, %v887_v50 }
 0x167   : > { %v973_v46 = vadd.f32 %v941_v23, %v827_v24  ;;  %v974_v15 = vadd.f32 %v942_v30, %v828_v32 }
 0x169   : > { %v1005_v37 = vmax.f32 %v973_v46, 0.0  ;;  %v1006_v13 = vmax.f32 %v974_v15, 0.0  ;;  %v745_v3 = vpop.permute.xlu1 %744 }
 0x16a   : > { %v797_v1 = vmul.f32 %v1845_v60, %v745_v3  ;;  %v798_v35 = vmul.f32 %v1847_v61, %v745_v3  ;;  %v831_v60 = vadd.f32 %v799_v7, %v685_v31 }
 0x16b   : > { %v1024_v29 = vpack.c.bf16 %v1006_v13, %v1004_v28  ;;  %v1023_v49 = vpack.c.bf16 %v1005_v37, %v1003_v48 }
 0x16c   : > { %v829_v56 = vadd.f32 %v797_v1, %v683_v10  ;;  %v830_v58 = vadd.f32 %v798_v35, %v684_v45 }
 0x16d   : > { %1199 = vmatprep.subr.bf16.mxu0 %v1024_v29  ;;  %1478 = vmatprep.subr.bf16.mxu1 %v1024_v29 }
 0x16e   : > { %v891_v57 = vpop.permute.xlu1 %890  ;;  %1200 = vmatpush1.bf16.msra.mxu0 %v1023_v49  ;;  %1486 = vmatpush1.bf16.msra.mxu1 %v1023_v49 }
 0x16f   : > { %v943_v40 = vmul.f32 %v1974_v9, %v891_v57  ;;  %v944_v52 = vmul.f32 %v1976_v11, %v891_v57 }
 0x171   : > { %v975_v20 = vadd.f32 %v943_v40, %v829_v56  ;;  %v976_v53 = vadd.f32 %v944_v52, %v830_v58 }
 0x172   : > { %v895_v27 = vpop.permute.xlu1 %894 }
 0x173   : > { %v945_v36 = vmul.f32 %v1974_v9, %v895_v27  ;;  %v946_v61 = vmul.f32 %v1976_v11, %v895_v27  ;;  %v1007_v16 = vmax.f32 %v975_v20, 0.0  ;;  %v1008_v17 = vmax.f32 %v976_v53, 0.0  ;;  %v1560_v9 = vld [vmem:[%s2332_s3 + $0x20] sm:$0xff]   ;;  %v1561_v11 = vld [vmem:[%s2332_s3 + $0x8] sm:$0xff]   ;;  %v1062_v50 = vpop.permute.xlu0 %1061 }
 0x175   : > { %v977_v21 = vadd.f32 %v945_v36, %v831_v60  ;;  %v978_v54 = vadd.f32 %v946_v61, %v832_v14 }
 0x177   : > { %v1009_v59 = vmax.f32 %v977_v21, 0.0  ;;  %v1010_v8 = vmax.f32 %v978_v54, 0.0  ;;  %v1067_v24 = vpop.permute.xlu1 %1066  ;;  %v1077_v32 = vpop.permute.xlu0 %1076 }
 0x179   : > { %v1026_v22 = vpack.c.bf16 %v1010_v8, %v1008_v17  ;;  %v1025_v39 = vpack.c.bf16 %v1009_v59, %v1007_v16 }
 0x17b   : > { %1201 = vmatprep.subr.bf16.mxu0 %v1026_v22  ;;  %1479 = vmatprep.subr.bf16.mxu1 %v1026_v22  ;;  %v1072_v23 = vpop.permute.xlu1 %1071  ;;  %v2266_v30 = vpop.permute.xlu0 %1086 }
 0x17c   : > { %1202 = vmatpush1.bf16.msra.mxu0 %v1025_v39  ;;  %1487 = vmatpush1.bf16.msra.mxu1 %v1025_v39 }
 0x17f   : > { %1220 = vmatmul.mubr.bf16.vlgmr.msra.gmra.mrb[0].mxu0 %v1559_v12  ;;  %1260 = vmatmul.mubr.bf16.vlgmr.msra.gmra.mrb[0].mxu1 %v1560_v9  ;;  %v2268_v46 = vpop.permute.xlu1 %1081  ;;  %v2270_v15 = vpop.permute.xlu0 %1096 }
 0x180   : > { %1229 = vmatprep.mubr.bf16.mxu0 %v2337_v43  ;;  %1269 = vmatprep.mubr.bf16.mxu1 %v2337_v43 }
 0x183   : > { %v1107_v44 = vpop.permute.xlu0 %1106 }
 0x187   : > { %1230 = vmatmul.mubr.bf16.gmra.mrb[4].mxu0 %v1561_v11  ;;  %1270 = vmatmul.mubr.bf16.gmra.mrb[4].mxu1 %v1562_v55 }
 0x188   : > { %1239 = vmatprep.mubr.bf16.mxu0 %v2337_v43  ;;  %1279 = vmatprep.mubr.bf16.mxu1 %v2337_v43  ;;  %v1117_v57 = vpop.permute.xlu0 %1116 }
 0x18f   : > { %1240 = vmatmul.mubr.bf16.gmra.mrb[8].mxu0 %v1563_v19  ;;  %1280 = vmatmul.mubr.bf16.gmra.mrb[8].mxu1 %v1564_v6  ;;  %v1127_v19 = vpop.permute.xlu0 %1126 }
 0x190   : > { %1249 = vmatprep.mubr.bf16.mxu0 %v2337_v43  ;;  %1289 = vmatprep.mubr.bf16.mxu1 %v2337_v43  ;;  %v2272_v43 = vpop.permute.xlu1 %1091 }
 0x194   : > { %v1102_v26 = vpop.permute.xlu1 %1101 }
 0x197   : > { %1250 = vmatmul.mubr.bf16.gmra.mrb[12].mxu0 %v1565_v38  ;;  %1290 = vmatmul.mubr.bf16.gmra.mrb[12].mxu1 %v1566_v42 }
 0x198   : > { %v1112_v10 = vpop.permute.xlu1 %1111 }
 0x19c   : > { %v1122_v6 = vpop.permute.xlu1 %1121 }
 0x252   : > { %v1221_v47 = vpop.f32.mrb[0].mxu0  ;;  %v1261_v37 = vpop.f32.mrb[0].mxu1 }
 0x253   : > { %v1222_v13 = vadd.f32 %v1221_v47, %v1062_v50  ;;  %v1262_v3 = vadd.f32 %v1261_v37, %v1102_v26  ;;  %v1223_v28 = vpop.f32.mrb[1].mxu0  ;;  %v1263_v48 = vpop.f32.mrb[1].mxu1 }
 0x254   : > { %v1224_v18 = vadd.f32 %v1223_v28, %v1062_v50  ;;  %v1264_v41 = vadd.f32 %v1263_v48, %v1102_v26  ;;  %v1225_v2 = vpop.f32.mrb[2].mxu0  ;;  %v1265_v34 = vpop.f32.mrb[2].mxu1 }
 0x255   : > { %v1300_v5 = vmax.f32 %v1222_v13, 0.0  ;;  %v1316_v25 = vmax.f32 %v1262_v3, 0.0  ;;  %v1226_v29 = vadd.f32 %v1225_v2, %v1067_v24  ;;  %v1266_v49 = vadd.f32 %v1265_v34, %v1107_v44  ;;  %v1227_v4 = vpop.f32.mrb[3].mxu0  ;;  %v1267_v33 = vpop.f32.mrb[3].mxu1 }
 0x256   : > { %v1301_v51 = vmax.f32 %v1224_v18, 0.0  ;;  %v1317_v7 = vmax.f32 %v1264_v41, 0.0  ;;  %v1228_v0 = vadd.f32 %v1227_v4, %v1067_v24  ;;  %v1268_v1 = vadd.f32 %v1267_v33, %v1107_v44  ;;  %v1137_v33 = vpop.permute.xlu0 %1136 }
 0x257   : > { %1332 = vst [vmem:[%s2278_s11] sm:$0xff] %v1300_v5  ;;  %1348 = vst [vmem:[%s2278_s11 + $0x80] sm:$0xff] %v1316_v25  ;;  %v1302_v35 = vmax.f32 %v1226_v29, 0.0  ;;  %v1318_v31 = vmax.f32 %v1266_v49, 0.0 }
 0x258   : > { %1333 = vst [vmem:[%s2278_s11 + $0x8] sm:$0xff] %v1301_v51  ;;  %1349 = vst [vmem:[%s2278_s11 + $0x88] sm:$0xff] %v1317_v7  ;;  %v1303_v62 = vmax.f32 %v1228_v0, 0.0  ;;  %v1319_v63 = vmax.f32 %v1268_v1, 0.0  ;;  %v1132_v51 = vpop.permute.xlu1 %1131 }
 0x259   : > { %1334 = vst [vmem:[%s2278_s11 + $0x10] sm:$0xff] %v1302_v35  ;;  %1350 = vst [vmem:[%s2278_s11 + $0x90] sm:$0xff] %v1318_v31 }
 0x25a   : > { %1335 = vst [vmem:[%s2278_s11 + $0x18] sm:$0xff] %v1303_v62  ;;  %1351 = vst [vmem:[%s2278_s11 + $0x98] sm:$0xff] %v1319_v63  ;;  %v1231_v45 = vpop.f32.mrb[4].mxu0  ;;  %v1271_v40 = vpop.f32.mrb[4].mxu1 }
 0x25b   : > { %v1232_v52 = vadd.f32 %v1231_v45, %v1072_v23  ;;  %v1272_v56 = vadd.f32 %v1271_v40, %v1112_v10  ;;  %v1233_v58 = vpop.f32.mrb[5].mxu0  ;;  %v1273_v60 = vpop.f32.mrb[5].mxu1 }
 0x25c   : > { %v1234_v14 = vadd.f32 %v1233_v58, %v1072_v23  ;;  %v1274_v27 = vadd.f32 %v1273_v60, %v1112_v10  ;;  %v1235_v20 = vpop.f32.mrb[6].mxu0  ;;  %v1275_v53 = vpop.f32.mrb[6].mxu1 }
 0x25d   : > { %v1304_v36 = vmax.f32 %v1232_v52, 0.0  ;;  %v1320_v61 = vmax.f32 %v1272_v56, 0.0  ;;  %v1236_v21 = vadd.f32 %v1235_v20, %v1077_v32  ;;  %v1276_v54 = vadd.f32 %v1275_v53, %v1117_v57  ;;  %v1237_v16 = vpop.f32.mrb[7].mxu0  ;;  %v1277_v17 = vpop.f32.mrb[7].mxu1 }
 0x25e   : > { %v1305_v59 = vmax.f32 %v1234_v14, 0.0  ;;  %v1321_v8 = vmax.f32 %v1274_v27, 0.0  ;;  %v1238_v22 = vadd.f32 %v1237_v16, %v1077_v32  ;;  %v1278_v39 = vadd.f32 %v1277_v17, %v1117_v57 }
 0x25f   : > { %1336 = vst [vmem:[%s2278_s11 + $0x20] sm:$0xff] %v1304_v36  ;;  %1352 = vst [vmem:[%s2278_s11 + $0xa0] sm:$0xff] %v1320_v61  ;;  %v1306_v12 = vmax.f32 %v1236_v21, 0.0  ;;  %v1322_v9 = vmax.f32 %v1276_v54, 0.0 }
 0x260   : > { %1337 = vst [vmem:[%s2278_s11 + $0x28] sm:$0xff] %v1305_v59  ;;  %1353 = vst [vmem:[%s2278_s11 + $0xa8] sm:$0xff] %v1321_v8  ;;  %v1307_v11 = vmax.f32 %v1238_v22, 0.0  ;;  %v1323_v55 = vmax.f32 %v1278_v39, 0.0 }
 0x261   : > { %1338 = vst [vmem:[%s2278_s11 + $0x30] sm:$0xff] %v1306_v12  ;;  %1354 = vst [vmem:[%s2278_s11 + $0xb0] sm:$0xff] %v1322_v9 }
 0x262   : > { %1339 = vst [vmem:[%s2278_s11 + $0x38] sm:$0xff] %v1307_v11  ;;  %1355 = vst [vmem:[%s2278_s11 + $0xb8] sm:$0xff] %v1323_v55  ;;  %v1241_v38 = vpop.f32.mrb[8].mxu0  ;;  %v1281_v42 = vpop.f32.mrb[8].mxu1 }
 0x263   : > { %v1242_v50 = vadd.f32 %v1241_v38, %v2268_v46  ;;  %v1282_v24 = vadd.f32 %v1281_v42, %v1122_v6  ;;  %v1243_v32 = vpop.f32.mrb[9].mxu0  ;;  %v1283_v23 = vpop.f32.mrb[9].mxu1 }
 0x264   : > { %v1244_v44 = vadd.f32 %v1243_v32, %v2268_v46  ;;  %v1284_v26 = vadd.f32 %v1283_v23, %v1122_v6  ;;  %v1245_v47 = vpop.f32.mrb[10].mxu0  ;;  %v1285_v37 = vpop.f32.mrb[10].mxu1 }
 0x265   : > { %v1308_v13 = vmax.f32 %v1242_v50, 0.0  ;;  %v1324_v3 = vmax.f32 %v1282_v24, 0.0  ;;  %v1246_v28 = vadd.f32 %v1245_v47, %v2266_v30  ;;  %v1286_v48 = vadd.f32 %v1285_v37, %v1127_v19  ;;  %v1247_v18 = vpop.f32.mrb[11].mxu0  ;;  %v1287_v41 = vpop.f32.mrb[11].mxu1 }
 0x266   : > { %v1309_v2 = vmax.f32 %v1244_v44, 0.0  ;;  %v1325_v34 = vmax.f32 %v1284_v26, 0.0  ;;  %v1248_v46 = vadd.f32 %v1247_v18, %v2266_v30  ;;  %v1288_v5 = vadd.f32 %v1287_v41, %v1127_v19 }
 0x267   : > { %1340 = vst [vmem:[%s2278_s11 + $0x40] sm:$0xff] %v1308_v13  ;;  %1356 = vst [vmem:[%s2278_s11 + $0xc0] sm:$0xff] %v1324_v3  ;;  %v1310_v25 = vmax.f32 %v1246_v28, 0.0  ;;  %v1326_v29 = vmax.f32 %v1286_v48, 0.0 }
 0x268   : > { %1341 = vst [vmem:[%s2278_s11 + $0x48] sm:$0xff] %v1309_v2  ;;  %1357 = vst [vmem:[%s2278_s11 + $0xc8] sm:$0xff] %v1325_v34  ;;  %v1311_v49 = vmax.f32 %v1248_v46, 0.0  ;;  %v1327_v4 = vmax.f32 %v1288_v5, 0.0 }
 0x269   : > { %1342 = vst [vmem:[%s2278_s11 + $0x50] sm:$0xff] %v1310_v25  ;;  %1358 = vst [vmem:[%s2278_s11 + $0xd0] sm:$0xff] %v1326_v29 }
 0x26a   : > { %1343 = vst [vmem:[%s2278_s11 + $0x58] sm:$0xff] %v1311_v49  ;;  %1359 = vst [vmem:[%s2278_s11 + $0xd8] sm:$0xff] %v1327_v4  ;;  %v1251_v7 = vpop.f32.mrb[12].mxu0  ;;  %v1291_v0 = vpop.f32.mrb[12].mxu1 }
 0x26b   : > { %v1252_v1 = vadd.f32 %v1251_v7, %v2272_v43  ;;  %v1292_v30 = vadd.f32 %v1291_v0, %v1132_v51  ;;  %v1253_v35 = vpop.f32.mrb[13].mxu0  ;;  %v1293_v31 = vpop.f32.mrb[13].mxu1 }
 0x26c   : > { %v1254_v62 = vadd.f32 %v1253_v35, %v2272_v43  ;;  %v1294_v63 = vadd.f32 %v1293_v31, %v1132_v51  ;;  %v1255_v57 = vpop.f32.mrb[14].mxu0  ;;  %v1295_v10 = vpop.f32.mrb[14].mxu1 }
 0x26d   : > { %v1312_v45 = vmax.f32 %v1252_v1, 0.0  ;;  %v1328_v40 = vmax.f32 %v1292_v30, 0.0  ;;  %v1256_v52 = vadd.f32 %v1255_v57, %v2270_v15  ;;  %v1296_v56 = vadd.f32 %v1295_v10, %v1137_v33  ;;  %v1257_v58 = vpop.f32.mrb[15].mxu0  ;;  %v1297_v60 = vpop.f32.mrb[15].mxu1 }
 0x26e   : > { %v1313_v14 = vmax.f32 %v1254_v62, 0.0  ;;  %v1329_v27 = vmax.f32 %v1294_v63, 0.0  ;;  %v1258_v43 = vadd.f32 %v1257_v58, %v2270_v15  ;;  %v1298_v20 = vadd.f32 %v1297_v60, %v1137_v33 }
 0x26f   : > { %1344 = vst [vmem:[%s2278_s11 + $0x60] sm:$0xff] %v1312_v45  ;;  %1360 = vst [vmem:[%s2278_s11 + $0xe0] sm:$0xff] %v1328_v40  ;;  %v1314_v53 = vmax.f32 %v1256_v52, 0.0  ;;  %v1330_v36 = vmax.f32 %v1296_v56, 0.0 }
 0x270   : > { %1345 = vst [vmem:[%s2278_s11 + $0x68] sm:$0xff] %v1313_v14  ;;  %1361 = vst [vmem:[%s2278_s11 + $0xe8] sm:$0xff] %v1329_v27  ;;  %v1315_v61 = vmax.f32 %v1258_v43, 0.0  ;;  %v1331_v21 = vmax.f32 %v1298_v20, 0.0 }
 0x271   : > { %1346 = vst [vmem:[%s2278_s11 + $0x70] sm:$0xff] %v1314_v53  ;;  %1362 = vst [vmem:[%s2278_s11 + $0xf0] sm:$0xff] %v1330_v36 }
 0x272   : > { %1347 = vst [vmem:[%s2278_s11 + $0x78] sm:$0xff] %v1315_v61  ;;  %1363 = vst [vmem:[%s2278_s11 + $0xf8] sm:$0xff] %v1331_v21 }
 0x273 PF: > { %s15_s20 = sadd.s32 1, %s1589_s20   ;;  %s2338_s18 = smov %s1585_s19 }
 0x274   : > { %p12_p5 = scmp.ge.s32.totalorder %s15_s20, 4   ;;  %s2339_s19 = smov %s2341_s21 }
 0x276   :  { %14 = sbr.rel (!%p12_p5) target bundleno = 2 (0x2), region = 70 }

</bundles_post_ra>
